<compile_context>
chip_gen: v6e
topology: v6e:2x2x1
jax: 0.10.0
libtpu: 0.0.40
codegen_flags: <defaults>
</compile_context>

<pallas_src>
import functools

import jax
import jax.numpy as jnp
from jax.experimental import pallas as pl
from jax.experimental.pallas import tpu as pltpu

_PACK = 8  # rows packed along the lane axis (= sublanes per vreg)


def _decoder_kernel(z_ref, w1_ref, b1_ref, w2_ref, b2_ref, w3_ref, b3_ref,
                    mean_ref):
    """Fused 3-layer MLP on row-packed operands: relu(relu(x@W1+b1)@W2+b2)@W3+b3."""
    x = z_ref[...]                                                    # [R, 8*Z]
    h = jnp.dot(x, w1_ref[...], preferred_element_type=jnp.float32) + b1_ref[...]
    h = jnp.maximum(h, 0.0)                                           # [R, 8*H0]
    h = jnp.dot(h, w2_ref[...], preferred_element_type=jnp.float32) + b2_ref[...]
    h = jnp.maximum(h, 0.0)                                           # [R, 8*H1]
    m = jnp.dot(h, w3_ref[...], preferred_element_type=jnp.float32) + b3_ref[...]
    mean_ref[...] = m.astype(mean_ref.dtype)                          # [R, 8*D]


def _pack_weight(w):
    """[in, out] -> block-diagonal [8*in, 8*out]  (kron(I8, w))."""
    return jnp.kron(jnp.eye(_PACK, dtype=w.dtype), w)


def _pack_bias(b):
    """[1, out] -> [1, 8*out] (bias replicated per packed slot)."""
    return jnp.tile(b, (1, _PACK))


def gaussian_decoder_forward(z, params, *, row_tile=2048):
    """z: [..., Z] float32.  Returns (mean, scale), each [..., D], scale == 1."""
    assert row_tile % (8 * _PACK) == 0, "row_tile must be a multiple of 64"
    w1, b1, w2, b2, w3, b3 = params
    zsize = z.shape[-1]
    h0 = w1.shape[1]
    h1 = w2.shape[1]
    d = w3.shape[1]

    lead_shape = z.shape[:-1]
    n = 1
    for s in lead_shape:
        n *= s
    z2d = z.reshape(n, zsize)

    # Round row count up to the pack factor (8).  Typical B*T already satisfy
    # this, so the (cheap, tail-only logical) pad is usually skipped entirely.
    n8 = pl.cdiv(n, _PACK) * _PACK
    if n8 != n:
        z2d = jnp.pad(z2d, ((0, n8 - n), (0, 0)))

    # Lane-dense packing: 8 consecutive rows side by side on the lane axis.
    # Contiguous row-major reshape -> no data movement.
    zp = z2d.reshape(n8 // _PACK, _PACK * zsize)

    # Block-diagonal weights / tiled biases act independently on each slot.
    w1p, b1p = _pack_weight(w1), _pack_bias(b1)
    w2p, b2p = _pack_weight(w2), _pack_bias(b2)
    w3p, b3p = _pack_weight(w3), _pack_bias(b3)

    zdp, h0p, h1p, dp = _PACK * zsize, _PACK * h0, _PACK * h1, _PACK * d

    rows_packed = n8 // _PACK
    rt = min(row_tile, n8)                 # original-problem rows per grid step
    brows = rt // _PACK                    # packed rows per grid step
    grid = (pl.cdiv(rows_packed, brows),)  # partial last block clipped by Pallas

    in_specs = [
        pl.BlockSpec((brows, zdp), lambda i: (i, 0)),
        # Weights/biases: constant index_map -> fetched once, held in VMEM.
        pl.BlockSpec((zdp, h0p), lambda i: (0, 0)),
        pl.BlockSpec((1, h0p), lambda i: (0, 0)),
        pl.BlockSpec((h0p, h1p), lambda i: (0, 0)),
        pl.BlockSpec((1, h1p), lambda i: (0, 0)),
        pl.BlockSpec((h1p, dp), lambda i: (0, 0)),
        pl.BlockSpec((1, dp), lambda i: (0, 0)),
    ]
    out_specs = pl.BlockSpec((brows, dp), lambda i: (i, 0))

    mean_p = pl.pallas_call(
        _decoder_kernel,
        out_shape=jax.ShapeDtypeStruct((rows_packed, dp), jnp.float32),
        grid=grid,
        in_specs=in_specs,
        out_specs=out_specs,
        compiler_params=pltpu.CompilerParams(
            dimension_semantics=("parallel",)),
    )(zp, w1p, b1p, w2p, b2p, w3p, b3p)

    # Undo the packing (row-major, contiguous -> free), drop padded tail rows.
    mean = mean_p.reshape(n8, d)[:n].reshape(*lead_shape, d)
    # Normal(loc=mean, scale=1): the scale is a constant; it is deliberately
    # NOT produced by the kernel (writing a full ones tensor from the kernel
    # would nearly double its HBM write traffic).
    scale = jnp.ones_like(mean)
    return mean, scale


def init_params(key, z_size, hidden_sizes, output_size):
    """Deterministic parameter init (PyTorch Linear default: U(-1/sqrt(fan_in), +)).
    Weights are stored as [in, out] (transposed vs. torch's [out, in])."""
    dims = [(z_size, hidden_sizes[0]),
            (hidden_sizes[0], hidden_sizes[1]),
            (hidden_sizes[1], output_size)]
    params = []
    for fan_in, fan_out in dims:
        key, kw, kb = jax.random.split(key, 3)
        bound = 1.0 / (fan_in ** 0.5)
        w = jax.random.uniform(kw, (fan_in, fan_out), jnp.float32, -bound, bound)
        b = jax.random.uniform(kb, (1, fan_out), jnp.float32, -bound, bound)
        params += [w, b]
    return tuple(params)


def _reference_forward(z, params):
    w1, b1, w2, b2, w3, b3 = params
    h1 = jnp.maximum(z @ w1 + b1[0], 0.0)
    h2 = jnp.maximum(h1 @ w2 + b2[0], 0.0)
    mean = h2 @ w3 + b3[0]
    return mean, jnp.ones_like(mean)


if __name__ == "__main__":
    # Small shapes consistent with the module's forward: z is [batch, seq, z_size].
    B, T = 2, 8
    Z_SIZE = 4
    HIDDEN_SIZES = (32, 32)
    OUTPUT_SIZE = 16

    key = jax.random.PRNGKey(0)
    kz, kp = jax.random.split(key)
    z = jax.random.normal(kz, (B, T, Z_SIZE), dtype=jnp.float32)
    params = init_params(kp, Z_SIZE, HIDDEN_SIZES, OUTPUT_SIZE)

    fwd = jax.jit(functools.partial(gaussian_decoder_forward, row_tile=2048))
    mean, scale = fwd(z, params)
    jax.block_until_ready((mean, scale))

    ref_mean, ref_scale = _reference_forward(z.reshape(-1, Z_SIZE), params)
    ref_mean = ref_mean.reshape(B, T, OUTPUT_SIZE)
    ref_scale = ref_scale.reshape(B, T, OUTPUT_SIZE)

    assert mean.shape == (B, T, OUTPUT_SIZE) and scale.shape == (B, T, OUTPUT_SIZE)
    assert jnp.allclose(mean, ref_mean, atol=1e-5, rtol=1e-5)
    assert jnp.allclose(scale, ref_scale)
    # TODO(synk): the torch module returns a torch.distributions.Normal object;
    # here we return its (loc, scale) tensors, which fully determine it.
    print("KERNEL_OK")
</pallas_src>

<mosaic_0001>
module attributes {stable_mosaic.version = 11 : i64} {
  func.func @_decoder_kernel(%arg0: i32, %arg1: memref<2x32xf32, #tpu.memory_space<vmem>>, %arg2: memref<32x256xf32, #tpu.memory_space<vmem>>, %arg3: memref<1x256xf32, #tpu.memory_space<vmem>>, %arg4: memref<256x256xf32, #tpu.memory_space<vmem>>, %arg5: memref<1x256xf32, #tpu.memory_space<vmem>>, %arg6: memref<256x128xf32, #tpu.memory_space<vmem>>, %arg7: memref<1x128xf32, #tpu.memory_space<vmem>>, %arg8: memref<2x128xf32, #tpu.memory_space<vmem>>) attributes {dimension_semantics = [#tpu.dimension_semantics<parallel>], iteration_bounds = array<i64: 1>, scalar_prefetch = 0 : i64, scratch_operands = 0 : i64, tpu.core_type = #tpu.core_type<tc>, window_params = [{transform_indices = @transform_0, window_bounds = array<i64: 2, 32>}, {pipeline_mode = #tpu.pipeline_mode<synchronous>, transform_indices = @transform_1, window_bounds = array<i64: 32, 256>}, {pipeline_mode = #tpu.pipeline_mode<synchronous>, transform_indices = @transform_2, window_bounds = array<i64: 1, 256>}, {pipeline_mode = #tpu.pipeline_mode<synchronous>, transform_indices = @transform_3, window_bounds = array<i64: 256, 256>}, {pipeline_mode = #tpu.pipeline_mode<synchronous>, transform_indices = @transform_4, window_bounds = array<i64: 1, 256>}, {pipeline_mode = #tpu.pipeline_mode<synchronous>, transform_indices = @transform_5, window_bounds = array<i64: 256, 128>}, {pipeline_mode = #tpu.pipeline_mode<synchronous>, transform_indices = @transform_6, window_bounds = array<i64: 1, 128>}, {transform_indices = @transform_7, window_bounds = array<i64: 2, 128>}]} {
    %c0 = arith.constant 0 : index
    %c0_0 = arith.constant 0 : index
    %0 = vector.load %arg1[%c0, %c0_0] : memref<2x32xf32, #tpu.memory_space<vmem>>, vector<2x32xf32>
    %c0_1 = arith.constant 0 : index
    %c0_2 = arith.constant 0 : index
    %1 = vector.load %arg2[%c0_1, %c0_2] : memref<32x256xf32, #tpu.memory_space<vmem>>, vector<32x256xf32>
    %cst = arith.constant dense<0.000000e+00> : vector<2x256xf32>
    %2 = tpu.matmul %0, %1, %cst {dimension_numbers = #tpu.dot_dimension_numbers<[1], [0], [0], [1], [0, 0, 1, 1], [], []>} : vector<2x32xf32>, vector<32x256xf32>, vector<2x256xf32> -> vector<2x256xf32>
    %c0_3 = arith.constant 0 : index
    %c0_4 = arith.constant 0 : index
    %3 = vector.load %arg3[%c0_3, %c0_4] : memref<1x256xf32, #tpu.memory_space<vmem>>, vector<1x256xf32>
    %4 = vector.broadcast %3 : vector<1x256xf32> to vector<2x256xf32>
    %5 = arith.addf %2, %4 : vector<2x256xf32>
    %cst_5 = arith.constant 0.000000e+00 : f32
    %6 = vector.broadcast %cst_5 : f32 to vector<2x256xf32>
    %7 = arith.maximumf %5, %6 : vector<2x256xf32>
    %c0_6 = arith.constant 0 : index
    %c0_7 = arith.constant 0 : index
    %8 = vector.load %arg4[%c0_6, %c0_7] : memref<256x256xf32, #tpu.memory_space<vmem>>, vector<256x256xf32>
    %cst_8 = arith.constant dense<0.000000e+00> : vector<2x256xf32>
    %9 = tpu.matmul %7, %8, %cst_8 {dimension_numbers = #tpu.dot_dimension_numbers<[1], [0], [0], [1], [0, 0, 1, 1], [], []>} : vector<2x256xf32>, vector<256x256xf32>, vector<2x256xf32> -> vector<2x256xf32>
    %c0_9 = arith.constant 0 : index
    %c0_10 = arith.constant 0 : index
    %10 = vector.load %arg5[%c0_9, %c0_10] : memref<1x256xf32, #tpu.memory_space<vmem>>, vector<1x256xf32>
    %11 = vector.broadcast %10 : vector<1x256xf32> to vector<2x256xf32>
    %12 = arith.addf %9, %11 : vector<2x256xf32>
    %cst_11 = arith.constant 0.000000e+00 : f32
    %13 = vector.broadcast %cst_11 : f32 to vector<2x256xf32>
    %14 = arith.maximumf %12, %13 : vector<2x256xf32>
    %c0_12 = arith.constant 0 : index
    %c0_13 = arith.constant 0 : index
    %15 = vector.load %arg6[%c0_12, %c0_13] : memref<256x128xf32, #tpu.memory_space<vmem>>, vector<256x128xf32>
    %cst_14 = arith.constant dense<0.000000e+00> : vector<2x128xf32>
    %16 = tpu.matmul %14, %15, %cst_14 {dimension_numbers = #tpu.dot_dimension_numbers<[1], [0], [0], [1], [0, 0, 1, 1], [], []>} : vector<2x256xf32>, vector<256x128xf32>, vector<2x128xf32> -> vector<2x128xf32>
    %c0_15 = arith.constant 0 : index
    %c0_16 = arith.constant 0 : index
    %17 = vector.load %arg7[%c0_15, %c0_16] : memref<1x128xf32, #tpu.memory_space<vmem>>, vector<1x128xf32>
    %18 = vector.broadcast %17 : vector<1x128xf32> to vector<2x128xf32>
    %19 = arith.addf %16, %18 : vector<2x128xf32>
    %c0_17 = arith.constant 0 : index
    %c0_18 = arith.constant 0 : index
    %20 = vector.load %arg8[%c0_17, %c0_18] : memref<2x128xf32, #tpu.memory_space<vmem>>, vector<2x128xf32>
    tpu.vector_store %arg8[%c0_17, %c0_18], %19 {strides = array<i32>} : memref<2x128xf32, #tpu.memory_space<vmem>>, vector<2x128xf32>,
    return
  }
  func.func @transform_0(%arg0: i32) -> (i32, i32) {
    %c0_i32 = arith.constant 0 : i32
    %c0_i32_0 = arith.constant 0 : i32
    return %arg0, %c0_i32 : i32, i32
  }
  func.func @transform_1(%arg0: i32) -> (i32, i32) {
    %c0_i32 = arith.constant 0 : i32
    %c0_i32_0 = arith.constant 0 : i32
    %c0_i32_1 = arith.constant 0 : i32
    return %c0_i32, %c0_i32_0 : i32, i32
  }
  func.func @transform_2(%arg0: i32) -> (i32, i32) {
    %c0_i32 = arith.constant 0 : i32
    %c0_i32_0 = arith.constant 0 : i32
    %c0_i32_1 = arith.constant 0 : i32
    return %c0_i32, %c0_i32_0 : i32, i32
  }
  func.func @transform_3(%arg0: i32) -> (i32, i32) {
    %c0_i32 = arith.constant 0 : i32
    %c0_i32_0 = arith.constant 0 : i32
    %c0_i32_1 = arith.constant 0 : i32
    return %c0_i32, %c0_i32_0 : i32, i32
  }
  func.func @transform_4(%arg0: i32) -> (i32, i32) {
    %c0_i32 = arith.constant 0 : i32
    %c0_i32_0 = arith.constant 0 : i32
    %c0_i32_1 = arith.constant 0 : i32
    return %c0_i32, %c0_i32_0 : i32, i32
  }
  func.func @transform_5(%arg0: i32) -> (i32, i32) {
    %c0_i32 = arith.constant 0 : i32
    %c0_i32_0 = arith.constant 0 : i32
    %c0_i32_1 = arith.constant 0 : i32
    return %c0_i32, %c0_i32_0 : i32, i32
  }
  func.func @transform_6(%arg0: i32) -> (i32, i32) {
    %c0_i32 = arith.constant 0 : i32
    %c0_i32_0 = arith.constant 0 : i32
    %c0_i32_1 = arith.constant 0 : i32
    return %c0_i32, %c0_i32_0 : i32, i32
  }
  func.func @transform_7(%arg0: i32) -> (i32, i32) {
    %c0_i32 = arith.constant 0 : i32
    %c0_i32_0 = arith.constant 0 : i32
    return %arg0, %c0_i32 : i32, i32
  }
}

</mosaic_0001>

<bundles_post_ra>
// kernel: gaussian_decoder_forward.1
= control target key start
LH: loop header
LB: loop body
LE: loop exit
PB: predicated region body
PF: predicated region fallthrough
CT: control target
= control target key end

     0   :  { %v425_v3 = vmov 0.0   ;;  %vm47_vm0 = vcmask 261120   ;;  %s793_s1 = inlined_call_operand.vmem [shape: f32[32,256], index: 1, kind: input, shape index: {}]   ;;  %s794_s3 = inlined_call_operand.vmem [shape: f32[256,256], index: 3, kind: input, shape index: {}]   ;;  %s795_s0 = inlined_call_operand.vmem [shape: f32[2,32], index: 0, kind: input, shape index: {}]   ;;  %s796_s5 = inlined_call_operand.vmem [shape: f32[256,128], index: 5, kind: input, shape index: {}]   ;;  %s797_s2 = inlined_call_operand.vmem [shape: f32[1,256], index: 2, kind: input, shape index: {}]   ;;  %s798_s4 = inlined_call_operand.vmem [shape: f32[1,256], index: 4, kind: input, shape index: {}]   ;;  %s799_s6 = inlined_call_operand.vmem [shape: f32[1,128], index: 6, kind: input, shape index: {}]   ;;  %s800_s7 = inlined_call_operand.vmem [shape: f32[2,128], index: 7, kind: output, shape index: {}]  }
   0x1   :  { %v34_v0 = vld [vmem:[%s793_s1 + $0x38] sm:$0xff]  ;;  %v33_v1 = vld [vmem:[%s793_s1 + $0x30] sm:$0xff]  ;;  %v32_v2 = vld [vmem:[%s793_s1 + $0x28] sm:$0xff]  ;;  %115 = vmatprep.mubr.f32.mxu0 %v425_v3 }
   0x2   :  { %75 = vmatprep.subr.mxu0 %v34_v0  ;;  %v31_v4 = vld [vmem:[%s793_s1 + $0x20] sm:$0xff]  ;;  %v30_v5 = vld [vmem:[%s793_s1 + $0x18] sm:$0xff]  ;;  %v29_v6 = vld [vmem:[%s793_s1 + $0x10] sm:$0xff] }
   0x3   :  { %76 = vmatpush1.msra.mxu0 %v33_v1  ;;  %v155_v7 = vld [vmem:[%s794_s3 + $0xf8] sm:$0xff]  ;;  %v154_v8 = vld [vmem:[%s794_s3 + $0xf0] sm:$0xff]  ;;  %v153_v9 = vld [vmem:[%s794_s3 + $0xe8] sm:$0xff] }
   0x4   :  { %77 = vmatprep.subr.mxu0 %v32_v2  ;;  %v28_v10 = vld [vmem:[%s793_s1 + $0x8] sm:$0xff]  ;;  %200 = vmatprep.subr.mxu1 %v155_v7  ;;  %v152_v11 = vld [vmem:[%s794_s3 + $0xe0] sm:$0xff]  ;;  %v151_v13 = vld [vmem:[%s794_s3 + $0xd8] sm:$0xff] }
   0x5   :  { %78 = vmatpush1.msra.mxu0 %v31_v4  ;;  %v27_v12 = vld [vmem:[%s793_s1] sm:$0xff]  ;;  %201 = vmatpush1.msra.mxu1 %v154_v8  ;;  %v150_v15 = vld [vmem:[%s794_s3 + $0xd0] sm:$0xff]  ;;  %v149_v16 = vld [vmem:[%s794_s3 + $0xc8] sm:$0xff] }
   0x6   :  { %79 = vmatprep.subr.mxu0 %v30_v5  ;;  %v26_v14 = vld [vmem:[%s795_s0] sm:$0x3]  ;;  %202 = vmatprep.subr.mxu1 %v153_v9  ;;  %v147_v18 = vld [vmem:[%s794_s3 + $0xb8] sm:$0xff]  ;;  %v146_v19 = vld [vmem:[%s794_s3 + $0xb0] sm:$0xff] }
   0x7   :  { %80 = vmatpush1.msra.mxu0 %v29_v6  ;;  %203 = vmatpush1.msra.mxu1 %v152_v11  ;;  %v148_v17 = vld [vmem:[%s794_s3 + $0xc0] sm:$0xff]  ;;  %v145_v20 = vld [vmem:[%s794_s3 + $0xa8] sm:$0xff]  ;;  %v143_v22 = vld [vmem:[%s794_s3 + $0x98] sm:$0xff] }
   0x8   :  { %81 = vmatprep.subr.mxu0 %v28_v10  ;;  %204 = vmatprep.subr.mxu1 %v151_v13  ;;  %v144_v21 = vld [vmem:[%s794_s3 + $0xa0] sm:$0xff]  ;;  %v142_v23 = vld [vmem:[%s794_s3 + $0x90] sm:$0xff]  ;;  %v141_v24 = vld [vmem:[%s794_s3 + $0x88] sm:$0xff] }
   0x9   :  { %82 = vmatpush1.msra.mxu0 %v27_v12  ;;  %205 = vmatpush1.msra.mxu1 %v150_v15  ;;  %v140_v25 = vld [vmem:[%s794_s3 + $0x80] sm:$0xff]  ;;  %v139_v26 = vld [vmem:[%s794_s3 + $0x78] sm:$0xff]  ;;  %v138_v27 = vld [vmem:[%s794_s3 + $0x70] sm:$0xff] }
   0xa   :  { %387 = vmatmul.mubr.msk.f32.vlgmr.msra.gmra.mxu0 %vm47_vm0, %v26_v14  ;;  %206 = vmatprep.subr.mxu1 %v149_v16  ;;  %v137_v28 = vld [vmem:[%s794_s3 + $0x68] sm:$0xff]  ;;  %v136_v29 = vld [vmem:[%s794_s3 + $0x60] sm:$0xff]  ;;  %v135_v30 = vld [vmem:[%s794_s3 + $0x58] sm:$0xff] }
   0xb   :  { %207 = vmatpush1.msra.mxu1 %v148_v17  ;;  %v134_v31 = vld [vmem:[%s794_s3 + $0x50] sm:$0xff]  ;;  %v133_v32 = vld [vmem:[%s794_s3 + $0x48] sm:$0xff]  ;;  %v132_v33 = vld [vmem:[%s794_s3 + $0x40] sm:$0xff] }
   0xc   :  { %208 = vmatprep.subr.mxu1 %v147_v18  ;;  %v131_v34 = vld [vmem:[%s794_s3 + $0x38] sm:$0xff]  ;;  %v130_v35 = vld [vmem:[%s794_s3 + $0x30] sm:$0xff]  ;;  %v129_v36 = vld [vmem:[%s794_s3 + $0x28] sm:$0xff] }
   0xd   :  { %209 = vmatpush1.msra.mxu1 %v146_v19  ;;  %v128_v37 = vld [vmem:[%s794_s3 + $0x20] sm:$0xff]  ;;  %v127_v38 = vld [vmem:[%s794_s3 + $0x18] sm:$0xff]  ;;  %v126_v39 = vld [vmem:[%s794_s3 + $0x10] sm:$0xff] }
   0xe   :  { %210 = vmatprep.subr.mxu1 %v145_v20  ;;  %v125_v40 = vld [vmem:[%s794_s3 + $0x8] sm:$0xff]  ;;  %v124_v41 = vld [vmem:[%s794_s3] sm:$0xff]  ;;  %v187_v42 = vld [vmem:[%s794_s3 + $0x1f8] sm:$0xff] }
   0xf   :  { %211 = vmatpush1.msra.mxu1 %v144_v21  ;;  %v186_v43 = vld [vmem:[%s794_s3 + $0x1f0] sm:$0xff]  ;;  %v185_v44 = vld [vmem:[%s794_s3 + $0x1e8] sm:$0xff]  ;;  %v184_v45 = vld [vmem:[%s794_s3 + $0x1e0] sm:$0xff] }
  0x10   :  { %212 = vmatprep.subr.mxu1 %v143_v22  ;;  %v183_v46 = vld [vmem:[%s794_s3 + $0x1d8] sm:$0xff]  ;;  %v182_v47 = vld [vmem:[%s794_s3 + $0x1d0] sm:$0xff]  ;;  %v181_v48 = vld [vmem:[%s794_s3 + $0x1c8] sm:$0xff] }
  0x11   :  { %213 = vmatpush1.msra.mxu1 %v142_v23  ;;  %v180_v49 = vld [vmem:[%s794_s3 + $0x1c0] sm:$0xff]  ;;  %v179_v50 = vld [vmem:[%s794_s3 + $0x1b8] sm:$0xff]  ;;  %v178_v51 = vld [vmem:[%s794_s3 + $0x1b0] sm:$0xff] }
  0x12   :  { %214 = vmatprep.subr.mxu1 %v141_v24  ;;  %v177_v52 = vld [vmem:[%s794_s3 + $0x1a8] sm:$0xff]  ;;  %v176_v53 = vld [vmem:[%s794_s3 + $0x1a0] sm:$0xff]  ;;  %v175_v54 = vld [vmem:[%s794_s3 + $0x198] sm:$0xff] }
  0x13   :  { %215 = vmatpush1.msra.mxu1 %v140_v25  ;;  %v174_v55 = vld [vmem:[%s794_s3 + $0x190] sm:$0xff]  ;;  %v173_v56 = vld [vmem:[%s794_s3 + $0x188] sm:$0xff]  ;;  %v172_v57 = vld [vmem:[%s794_s3 + $0x180] sm:$0xff] }
  0x14   :  { %216 = vmatprep.subr.mxu1 %v139_v26  ;;  %v171_v58 = vld [vmem:[%s794_s3 + $0x178] sm:$0xff]  ;;  %v170_v59 = vld [vmem:[%s794_s3 + $0x170] sm:$0xff]  ;;  %v169_v60 = vld [vmem:[%s794_s3 + $0x168] sm:$0xff] }
  0x15   :  { %217 = vmatpush1.msra.mxu1 %v138_v27  ;;  %v168_v61 = vld [vmem:[%s794_s3 + $0x160] sm:$0xff]  ;;  %v167_v62 = vld [vmem:[%s794_s3 + $0x158] sm:$0xff]  ;;  %v166_v63 = vld [vmem:[%s794_s3 + $0x150] sm:$0xff] }
  0x16   :  { %218 = vmatprep.subr.mxu1 %v137_v28  ;;  %v165_v0 = vld [vmem:[%s794_s3 + $0x148] sm:$0xff]  ;;  %v164_v1 = vld [vmem:[%s794_s3 + $0x140] sm:$0xff]  ;;  %v163_v2 = vld [vmem:[%s794_s3 + $0x138] sm:$0xff] }
  0x17   :  { %219 = vmatpush1.msra.mxu1 %v136_v29  ;;  %v162_v3 = vld [vmem:[%s794_s3 + $0x130] sm:$0xff]  ;;  %v161_v4 = vld [vmem:[%s794_s3 + $0x128] sm:$0xff]  ;;  %v160_v5 = vld [vmem:[%s794_s3 + $0x120] sm:$0xff] }
  0x18   :  { %220 = vmatprep.subr.mxu1 %v135_v30  ;;  %v159_v6 = vld [vmem:[%s794_s3 + $0x118] sm:$0xff]  ;;  %v158_v7 = vld [vmem:[%s794_s3 + $0x110] sm:$0xff]  ;;  %v157_v8 = vld [vmem:[%s794_s3 + $0x108] sm:$0xff] }
  0x19   :  { %221 = vmatpush1.msra.mxu1 %v134_v31  ;;  %v156_v9 = vld [vmem:[%s794_s3 + $0x100] sm:$0xff]  ;;  %v304_v10 = vld [vmem:[%s796_s5 + $0xf8] sm:$0xff]  ;;  %v303_v12 = vld [vmem:[%s796_s5 + $0xf0] sm:$0xff] }
  0x1a   :  { %222 = vmatprep.subr.mxu1 %v133_v32  ;;  %v288_v11 = vld [vmem:[%s796_s5 + $0x78] sm:$0xff]  ;;  %389 = vmatprep.subr.mxu0 %v304_v10  ;;  %v287_v13 = vld [vmem:[%s796_s5 + $0x70] sm:$0xff]  ;;  %v302_v14 = vld [vmem:[%s796_s5 + $0xe8] sm:$0xff] }
  0x1b   :  { %223 = vmatpush1.msra.mxu1 %v132_v33  ;;  %390 = vmatpush3.msra.mxu0 %v288_v11  ;;  %v286_v15 = vld [vmem:[%s796_s5 + $0x68] sm:$0xff]  ;;  %v301_v16 = vld [vmem:[%s796_s5 + $0xe0] sm:$0xff]  ;;  %v300_v18 = vld [vmem:[%s796_s5 + $0xd8] sm:$0xff] }
  0x1c   :  { %224 = vmatprep.subr.mxu1 %v131_v34  ;;  %391 = vmatprep.subr.mxu0 %v303_v12  ;;  %v285_v17 = vld [vmem:[%s796_s5 + $0x60] sm:$0xff]  ;;  %v284_v19 = vld [vmem:[%s796_s5 + $0x58] sm:$0xff]  ;;  %v299_v20 = vld [vmem:[%s796_s5 + $0xd0] sm:$0xff]  ;;  %v37_v34 = vlaneseq }
  0x1d   :  { %225 = vmatpush1.msra.mxu1 %v130_v35  ;;  %392 = vmatpush3.msra.mxu0 %v287_v13  ;;  %v283_v21 = vld [vmem:[%s796_s5 + $0x50] sm:$0xff]  ;;  %v298_v22 = vld [vmem:[%s796_s5 + $0xc8] sm:$0xff]  ;;  %v297_v24 = vld [vmem:[%s796_s5 + $0xc0] sm:$0xff] }
  0x1e   :  { %226 = vmatprep.subr.mxu1 %v129_v36  ;;  %393 = vmatprep.subr.mxu0 %v302_v14  ;;  %v282_v23 = vld [vmem:[%s796_s5 + $0x48] sm:$0xff]  ;;  %v281_v25 = vld [vmem:[%s796_s5 + $0x40] sm:$0xff]  ;;  %v296_v26 = vld [vmem:[%s796_s5 + $0xb8] sm:$0xff]  ;;  %v38_v35 = vshrl.u32 %v37_v34, 7 }
  0x1f   :  { %227 = vmatpush1.msra.mxu1 %v128_v37  ;;  %394 = vmatpush3.msra.mxu0 %v286_v15  ;;  %v280_v27 = vld [vmem:[%s796_s5 + $0x38] sm:$0xff]  ;;  %v295_v28 = vld [vmem:[%s796_s5 + $0xb0] sm:$0xff]  ;;  %v294_v30 = vld [vmem:[%s796_s5 + $0xa8] sm:$0xff] }
  0x20   :  { %228 = vmatprep.subr.mxu1 %v127_v38  ;;  %395 = vmatprep.subr.mxu0 %v301_v16  ;;  %v279_v29 = vld [vmem:[%s796_s5 + $0x30] sm:$0xff]  ;;  %v278_v31 = vld [vmem:[%s796_s5 + $0x28] sm:$0xff]  ;;  %v293_v32 = vld [vmem:[%s796_s5 + $0xa0] sm:$0xff]  ;;  %v39_v36 = vsub.s32 0, %v38_v35  ;;  %v43_v38 = vsub.s32 1, %v38_v35 }
  0x21   :  { %229 = vmatpush1.msra.mxu1 %v126_v39  ;;  %396 = vmatpush3.msra.mxu0 %v285_v17  ;;  %v277_v33 = vld [vmem:[%s796_s5 + $0x20] sm:$0xff] }
  0x22   :  { %230 = vmatprep.subr.mxu1 %v125_v40  ;;  %397 = vmatprep.subr.mxu0 %v300_v18  ;;  %v35_v37 = vld [vmem:[%s797_s2] sm:$0x3] }
  0x23   :  { %231 = vmatpush1.msra.mxu1 %v124_v41  ;;  %398 = vmatpush3.msra.mxu0 %v284_v19  ;;  %v40_v39 = vrot.slane %v35_v37, %v39_v36  ;;  %v44_v40 = vrot.slane %v35_v37, %v43_v38 }
  0x24   :  { %232 = vmatprep.subr.mxu1 %v187_v42  ;;  %399 = vmatprep.subr.mxu0 %v299_v20 }
  0x25   :  { %233 = vmatpush2.msra.mxu1 %v186_v43  ;;  %400 = vmatpush3.msra.mxu0 %v283_v21 }
  0x26   :  { %234 = vmatprep.subr.mxu1 %v185_v44  ;;  %401 = vmatprep.subr.mxu0 %v298_v22 }
  0x27   :  { %235 = vmatpush2.msra.mxu1 %v184_v45  ;;  %402 = vmatpush3.msra.mxu0 %v282_v23 }
  0x28   :  { %236 = vmatprep.subr.mxu1 %v183_v46  ;;  %403 = vmatprep.subr.mxu0 %v297_v24 }
  0x29   :  { %237 = vmatpush2.msra.mxu1 %v182_v47  ;;  %404 = vmatpush3.msra.mxu0 %v281_v25  ;;  %v292_v47 = vld [vmem:[%s796_s5 + $0x98] sm:$0xff] }
  0x2a   :  { %238 = vmatprep.subr.mxu1 %v181_v48  ;;  %405 = vmatprep.subr.mxu0 %v296_v26  ;;  %v276_v48 = vld [vmem:[%s796_s5 + $0x18] sm:$0xff] }
  0x2b   :  { %239 = vmatpush2.msra.mxu1 %v180_v49  ;;  %406 = vmatpush3.msra.mxu0 %v280_v27  ;;  %v291_v49 = vld [vmem:[%s796_s5 + $0x90] sm:$0xff] }
  0x2c   :  { %240 = vmatprep.subr.mxu1 %v179_v50  ;;  %407 = vmatprep.subr.mxu0 %v295_v28  ;;  %v275_v50 = vld [vmem:[%s796_s5 + $0x10] sm:$0xff] }
  0x2d   :  { %241 = vmatpush2.msra.mxu1 %v178_v51  ;;  %408 = vmatpush3.msra.mxu0 %v279_v29  ;;  %v290_v51 = vld [vmem:[%s796_s5 + $0x88] sm:$0xff] }
  0x2e   :  { %242 = vmatprep.subr.mxu1 %v177_v52  ;;  %409 = vmatprep.subr.mxu0 %v294_v30  ;;  %v274_v52 = vld [vmem:[%s796_s5 + $0x8] sm:$0xff] }
  0x2f   :  { %243 = vmatpush2.msra.mxu1 %v176_v53  ;;  %410 = vmatpush3.msra.mxu0 %v278_v31  ;;  %v289_v53 = vld [vmem:[%s796_s5 + $0x80] sm:$0xff] }
  0x30   :  { %244 = vmatprep.subr.mxu1 %v175_v54  ;;  %411 = vmatprep.subr.mxu0 %v293_v32  ;;  %v273_v54 = vld [vmem:[%s796_s5] sm:$0xff] }
  0x31   :  { %245 = vmatpush2.msra.mxu1 %v174_v55  ;;  %412 = vmatpush3.msra.mxu0 %v277_v33  ;;  %v188_v55 = vld [vmem:[%s798_s4] sm:$0x3] }
  0x32   :  { %246 = vmatprep.subr.mxu1 %v173_v56  ;;  %413 = vmatprep.subr.mxu0 %v292_v47  ;;  %v193_v56 = vrot.slane %v188_v55, %v39_v36 }
  0x33   :  { %247 = vmatpush2.msra.mxu1 %v172_v57  ;;  %414 = vmatpush3.msra.mxu0 %v276_v48  ;;  %v197_v57 = vrot.slane %v188_v55, %v43_v38 }
  0x34   :  { %248 = vmatprep.subr.mxu1 %v171_v58  ;;  %415 = vmatprep.subr.mxu0 %v291_v49 }
  0x35   :  { %249 = vmatpush2.msra.mxu1 %v170_v59  ;;  %416 = vmatpush3.msra.mxu0 %v275_v50 }
  0x36   :  { %250 = vmatprep.subr.mxu1 %v169_v60  ;;  %417 = vmatprep.subr.mxu0 %v290_v51 }
  0x37   :  { %251 = vmatpush2.msra.mxu1 %v168_v61  ;;  %418 = vmatpush3.msra.mxu0 %v274_v52 }
  0x38   :  { %252 = vmatprep.subr.mxu1 %v167_v62  ;;  %419 = vmatprep.subr.mxu0 %v289_v53 }
  0x39   :  { %253 = vmatpush2.msra.mxu1 %v166_v63  ;;  %420 = vmatpush3.msra.mxu0 %v273_v54 }
  0x3a   :  { %254 = vmatprep.subr.mxu1 %v165_v0 }
  0x3b   :  { %255 = vmatpush2.msra.mxu1 %v164_v1  ;;  %v388_v1 = vld [vmem:[%s799_s6] ss:$0 sm:$0xff] }
  0x3c   :  { %256 = vmatprep.subr.mxu1 %v163_v2 }
  0x3d   :  { %257 = vmatpush2.msra.mxu1 %v162_v3 }
  0x3e   :  { %258 = vmatprep.subr.mxu1 %v161_v4 }
  0x3f   :  { %259 = vmatpush2.msra.mxu1 %v160_v5 }
  0x40   :  { %260 = vmatprep.subr.mxu1 %v159_v6 }
  0x41   :  { %261 = vmatpush2.msra.mxu1 %v158_v7 }
  0x42   :  { %262 = vmatprep.subr.mxu1 %v157_v8 }
  0x43   :  { %263 = vmatpush2.msra.mxu1 %v156_v9 }
  0xca   :  { %v117_v41 = vpop.f32.mrf.mxu0 }
  0xcb   :  { %v118_v42 = vadd.f32 %v117_v41, %v40_v39 }
  0xcc   :  { %v119_v43 = vpop.f32.mrf.mxu0 }
  0xcd   :  { %v120_v44 = vadd.f32 %v119_v43, %v44_v40  ;;  %v122_v46 = vmax.f32 %v118_v42, 0.0 }
  0xcf   :  { %v123_v45 = vmax.f32 %v120_v44, 0.0 }
  0xd1   :  { %264 = vmatprep.mubr.f32.mxu1 %v123_v45 }
  0xd2   :  { %265 = vmatmul.mubr.f32.vlgmr.msra.gmra.mxu1 %v122_v46 }
 0x192   :  { %v266_v58 = vpop.f32.mrf.mxu1 }
 0x193   :  { %v267_v59 = vadd.f32 %v266_v58, %v193_v56 }
 0x194   :  { %v268_v60 = vpop.f32.mrf.mxu1 }
 0x195   :  { %v269_v61 = vadd.f32 %v268_v60, %v197_v57  ;;  %v271_v63 = vmax.f32 %v267_v59, 0.0 }
 0x197   :  { %v272_v62 = vmax.f32 %v269_v61, 0.0 }
 0x199   :  { %376 = vmatprep.mubr.f32.mxu0 %v272_v62 }
 0x19a   :  { %377 = vmatmul.mubr.f32.vlgmr.msra.gmra.mxu0 %v271_v63 }
 0x25a   :  { %v421_v0 = vpop.f32.mrf.mxu0 }
 0x25c   :  { %v422_v2 = vpop.f32.mrf.mxu0 }
 0x25d   :  { %v423_v3 = vadd.f32 %v422_v2, %v421_v0 }
 0x25f   :  { %v379_v4 = vadd.f32 %v423_v3, %v388_v1 }
 0x261   :  { %382 = vst [vmem:[%s800_s7] sm:$0x3] %v379_v4 }

</bundles_post_ra>
